<compile_context>
chip_gen: v7x
topology: tpu7x:2x2x1
jax: 0.10.0
libtpu: 0.0.40
codegen_flags: <defaults>
</compile_context>

<pallas_src>
import functools
import math

import jax
import jax.numpy as jnp
from jax.experimental import pallas as pl
from jax.experimental.pallas import tpu as pltpu


# ---------------------------------------------------------------------------
# Tiling helpers
# ---------------------------------------------------------------------------
def _round_up(x, m):
    return (x + m - 1) // m * m


def _tile_and_pad(dim, max_tile):
    """Pick a bounded block size and the (possibly padded) array extent."""
    if dim <= max_tile:
        return dim, dim                       # single full-dim block
    if dim % max_tile == 0:
        return max_tile, dim
    for t in (512, 256, 128):
        if t < max_tile and dim % t == 0:
            return t, dim
    return max_tile, _round_up(dim, max_tile)  # pad ragged edge, keep tile bounded


# ---------------------------------------------------------------------------
# Tiled matmul:  out = x @ w_t   (w_t is the pre-transposed (K, N) weight)
# ---------------------------------------------------------------------------
def _matmul_kernel(x_ref, w_ref, o_ref):
    # Output block is revisited across the K axis and is f32 -> accumulate in
    # place, no VMEM scratch needed.
    @pl.when(pl.program_id(2) == 0)
    def _():
        o_ref[...] = jnp.zeros_like(o_ref)

    o_ref[...] += jnp.dot(x_ref[...], w_ref[...],
                          preferred_element_type=jnp.float32)


def linear(x, w_t, *, tm_max=256, tn_max=256, tk_max=512,
           compute_dtype=jnp.float32):
    """out = x @ w_t with x:(M,K), w_t:(K,N). Output is f32.

    compute_dtype=bf16 feeds the MXU at native rate and halves HBM traffic for
    the operands; accumulation stays f32 via preferred_element_type.
    """
    M, K = x.shape
    K2, N = w_t.shape
    assert K == K2, "weight input_size mismatch"
    if compute_dtype != x.dtype:
        x = x.astype(compute_dtype)
        w_t = w_t.astype(compute_dtype)

    tm, Mp = _tile_and_pad(M, tm_max)
    tn, Np = _tile_and_pad(N, tn_max)
    tk, Kp = _tile_and_pad(K, tk_max)
    if (Mp, Kp) != (M, K):
        x = jnp.pad(x, ((0, Mp - M), (0, Kp - K)))
    if (Kp, Np) != (K, N):
        w_t = jnp.pad(w_t, ((0, Kp - K), (0, Np - N)))

    out = pl.pallas_call(
        _matmul_kernel,
        out_shape=jax.ShapeDtypeStruct((Mp, Np), jnp.float32),
        grid=(Mp // tm, Np // tn, Kp // tk),
        in_specs=[
            pl.BlockSpec((tm, tk), lambda i, j, k: (i, k)),
            pl.BlockSpec((tk, tn), lambda i, j, k: (k, j)),
        ],
        out_specs=pl.BlockSpec((tm, tn), lambda i, j, k: (i, j)),
        compiler_params=pltpu.CompilerParams(
            dimension_semantics=("parallel", "parallel", "arbitrary")),
    )(x, w_t)
    if (Mp, Np) != (M, N):
        out = out[:M, :N]
    return out


# ---------------------------------------------------------------------------
# Flash-style causal attention, heads read/written in (B, S, D) layout
# ---------------------------------------------------------------------------
def _flash_attn_kernel(q_ref, k_ref, v_ref, o_ref, m_ref, l_ref, acc_ref,
                       *, scale, dh, g_heads, tq, tkv):
    qi = pl.program_id(2)
    kvi = pl.program_id(3)

    @pl.when(kvi == 0)
    def _init():
        m_ref[...] = jnp.full_like(m_ref, -jnp.inf)
        l_ref[...] = jnp.zeros_like(l_ref)
        acc_ref[...] = jnp.zeros_like(acc_ref)

    # Strictly-upper-triangular kv blocks are fully masked -> skip the compute
    # entirely (their DMA is also suppressed by the clamped kv index_map).
    @pl.when(kvi <= qi)
    def _compute():
        q = q_ref[0] * scale          # fold 1/sqrt(dh) into q (O(tq*D) muls)
        k = k_ref[0]
        v = v_ref[0]

        # Block-local causal mask from (tq,1)/(1,tkv) iotas (broadcast compare).
        row = jax.lax.broadcasted_iota(jnp.int32, (tq, 1), 0) + qi * tq
        col = jax.lax.broadcasted_iota(jnp.int32, (1, tkv), 1) + kvi * tkv
        causal = col <= row           # (tq, tkv) via broadcasting

        for g in range(g_heads):
            lo, hi = g * dh, (g + 1) * dh
            s = jax.lax.dot_general(
                q[:, lo:hi], k[:, lo:hi],
                dimension_numbers=(((1,), (1,)), ((), ())),
                preferred_element_type=jnp.float32)
            # PyTorch quirk (scores*tril then ==0 -> -inf) as ONE fused select.
            s = jnp.where(causal & (s != 0.0), s, -jnp.inf)

            m_prev = m_ref[g]                                     # (tq, 1)
            m_new = jnp.maximum(m_prev, jnp.max(s, axis=-1, keepdims=True))
            alpha = jnp.exp(m_prev - m_new)
            p = jnp.exp(s - m_new)
            l_ref[g] = alpha * l_ref[g] + jnp.sum(p, axis=-1, keepdims=True)
            acc_ref[g] = alpha * acc_ref[g] + jnp.dot(
                p.astype(v.dtype), v[:, lo:hi],
                preferred_element_type=jnp.float32)
            m_ref[g] = m_new

    @pl.when(kvi == pl.num_programs(3) - 1)
    def _finalize():
        heads = []
        for g in range(g_heads):
            inv = pl.reciprocal(l_ref[g], approx=True)   # EUP, off the VPU path
            heads.append(acc_ref[g] * inv)
        # Single unmasked lane-dense store of the whole (tq, G*dh) slab.
        o_ref[0] = jnp.concatenate(heads, axis=-1).astype(o_ref.dtype)


def _heads_per_step(n_heads, dh):
    if dh % 128 == 0:
        return 1                        # a single head is already lane-dense
    if 128 % dh == 0 and n_heads % (128 // dh) == 0:
        return 128 // dh                # lane-dense multi-head slab (128 cols)
    return n_heads                      # fall back: one slab spanning full D


def flash_causal_attention(q, k, v, n_heads):
    """q, k, v, out: (B, S, D) with heads column-interleaved (PyTorch reshape
    layout). Output is already head-merged -> feeds the Wo matmul directly."""
    B, S, D = q.shape
    assert D % n_heads == 0
    dh = D // n_heads
    G = _heads_per_step(n_heads, dh)
    cols = G * dh
    n_groups = n_heads // G
    scale = 1.0 / math.sqrt(float(dh))

    # Sequence tile (tq == tkv); pad ragged long sequences to a 128 multiple.
    if S <= 128:
        t, Sp = S, S
    elif S % 128 == 0:
        t, Sp = 128, S
    else:
        t, Sp = 128, _round_up(S, 128)
    if Sp != S:
        pad = ((0, 0), (0, Sp - S), (0, 0))
        # Padded kv columns are masked by the causal test (col >= S > row);
        # padded q rows are sliced off below.
        q, k, v = jnp.pad(q, pad), jnp.pad(k, pad), jnp.pad(v, pad)

    q_spec = pl.BlockSpec((1, t, cols), lambda b, g, qi, kvi: (b, qi, g))
    # Clamp the kv block index for skipped (upper-triangular) steps so the
    # block index does not change -> Pallas does not re-issue the DMA.
    kv_spec = pl.BlockSpec(
        (1, t, cols), lambda b, g, qi, kvi: (b, jnp.minimum(kvi, qi), g))
    o_spec = pl.BlockSpec((1, t, cols), lambda b, g, qi, kvi: (b, qi, g))

    kern = functools.partial(_flash_attn_kernel, scale=scale, dh=dh,
                             g_heads=G, tq=t, tkv=t)
    out = pl.pallas_call(
        kern,
        out_shape=jax.ShapeDtypeStruct((B, Sp, D), jnp.float32),
        grid=(B, n_groups, Sp // t, Sp // t),
        in_specs=[q_spec, kv_spec, kv_spec],
        out_specs=o_spec,
        scratch_shapes=[
            pltpu.VMEM((G, t, 1), jnp.float32),    # running max  m
            pltpu.VMEM((G, t, 1), jnp.float32),    # running sum  l
            pltpu.VMEM((G, t, dh), jnp.float32),   # un-normalized accumulator
        ],
        compiler_params=pltpu.CompilerParams(
            dimension_semantics=("parallel", "parallel", "parallel",
                                 "arbitrary")),
    )(q, k, v)
    if Sp != S:
        out = out[:, :S, :]
    return out


# ---------------------------------------------------------------------------
# Full CustomMHA forward
# ---------------------------------------------------------------------------
def prepare_params(qkv_w, wo_w):
    """One-time parameter prep (outside the hot path): transpose the PyTorch
    (out, in) weights to (in, out) so the matmul rhs tile is lane-dense."""
    return qkv_w.T, wo_w.T


def custom_mha(x, qkv_wt, wo_wt, n_heads, *, compute_dtype=jnp.float32):
    """x: (B, S, D) or (S, D); qkv_wt: (D, 3D); wo_wt: (D, D) (pre-transposed)."""
    added_batch = x.ndim == 2
    if added_batch:
        x = x[None]
    B, S, D = x.shape
    assert D % n_heads == 0

    # 1) fused QKV projection -> (B, S, 3D); heads stay column-interleaved so
    #    the attention kernel slices them straight out via BlockSpec column
    #    indexing (no head split/merge transposes through HBM).
    qkv = linear(x.reshape(B * S, D), qkv_wt,
                 compute_dtype=compute_dtype).reshape(B, S, 3 * D)
    Q, K, V = jnp.split(qkv, 3, axis=-1)          # cheap XLA slices, (B,S,D) each

    # 2) flash-style causal attention; output already in (B, S, D) layout.
    attn = flash_causal_attention(Q, K, V, n_heads)

    # 3) output projection.
    out = linear(attn.reshape(B * S, D), wo_wt,
                 compute_dtype=compute_dtype).reshape(B, S, D)
    if added_batch:
        out = out[0]
    return out


# ---------------------------------------------------------------------------
# Plain-JAX reference (mirrors the PyTorch forward, including the mask quirk)
# ---------------------------------------------------------------------------
def ref_mha(x, qkv_w, wo_w, n_heads):
    B, S, D = x.shape
    dh = D // n_heads
    QKV = x @ qkv_w.T
    Q, K, V = jnp.split(QKV, 3, axis=-1)
    qh = Q.reshape(B, S, n_heads, dh).transpose(0, 2, 1, 3)
    kh = K.reshape(B, S, n_heads, dh).transpose(0, 2, 1, 3)
    vh = V.reshape(B, S, n_heads, dh).transpose(0, 2, 1, 3)
    scores = jnp.einsum('bhqd,bhkd->bhqk', qh, kh) / math.sqrt(float(dh))
    mask = jnp.tril(jnp.ones((S, S), dtype=scores.dtype))
    scores = scores * mask
    scores = jnp.where(scores == 0.0, -jnp.inf, scores)
    attn = jax.nn.softmax(scores, axis=-1)
    o = jnp.einsum('bhqk,bhkd->bhqd', attn, vh)
    o = o.transpose(0, 2, 1, 3).reshape(B, S, D)
    return o @ wo_w.T


if __name__ == "__main__":
    key = jax.random.PRNGKey(0)
    k_x, k_qkv, k_wo = jax.random.split(key, 3)

    B, S, d_model, n_heads = 2, 8, 32, 4

    # Parameter init matching the PyTorch __init__ semantics.
    qkv_w = 0.01 * jax.random.normal(k_qkv, (3 * d_model, d_model), jnp.float32)
    wo_w = 0.01 * jax.random.normal(k_wo, (d_model, d_model), jnp.float32)
    x = jax.random.normal(k_x, (B, S, d_model), jnp.float32)

    qkv_wt, wo_wt = prepare_params(qkv_w, wo_w)

    out = custom_mha(x, qkv_wt, wo_wt, n_heads)
    jax.block_until_ready(out)

    ref = ref_mha(x, qkv_w, wo_w, n_heads)
    assert out.shape == (B, S, d_model)
    assert jnp.allclose(out, ref, atol=1e-4, rtol=1e-3), \
        f"max abs err {jnp.max(jnp.abs(out - ref))}"

    # 2-D (unbatched) path from the PyTorch forward.
    out2d = custom_mha(x[0], qkv_wt, wo_wt, n_heads)
    jax.block_until_ready(out2d)
    assert out2d.shape == (S, d_model)
    assert jnp.allclose(out2d, ref[0], atol=1e-4, rtol=1e-3)

    # bf16-projection path (native MXU rate, halved HBM operand traffic);
    # attention stays f32 to preserve the exact-zero mask quirk.
    out_bf16 = custom_mha(x, qkv_wt, wo_wt, n_heads, compute_dtype=jnp.bfloat16)
    jax.block_until_ready(out_bf16)
    assert jnp.allclose(out_bf16, ref, atol=1e-3), \
        f"bf16 max abs err {jnp.max(jnp.abs(out_bf16 - ref))}"

    print("KERNEL_OK")
</pallas_src>

<mosaic_0001>
module attributes {stable_mosaic.version = 11 : i64} {
  func.func @_matmul_kernel(%arg0: i32, %arg1: i32, %arg2: i32, %arg3: memref<16x32xf32, #tpu.memory_space<vmem>>, %arg4: memref<32x96xf32, #tpu.memory_space<vmem>>, %arg5: memref<16x96xf32, #tpu.memory_space<vmem>>) attributes {dimension_semantics = [#tpu.dimension_semantics<parallel>, #tpu.dimension_semantics<parallel>, #tpu.dimension_semantics<arbitrary>], iteration_bounds = array<i64: 1, 1, 1>, scalar_prefetch = 0 : i64, scratch_operands = 0 : i64, tpu.core_type = #tpu.core_type<tc>, window_params = [{transform_indices = @transform_0, window_bounds = array<i64: 16, 32>}, {transform_indices = @transform_1, window_bounds = array<i64: 32, 96>}, {transform_indices = @transform_2, window_bounds = array<i64: 16, 96>}]} {
    %c0_i32 = arith.constant 0 : i32
    %0 = arith.cmpi eq, %arg2, %c0_i32 : i32
    %1 = arith.extui %0 : i1 to i32
    %c0_i32_0 = arith.constant 0 : i32
    %2 = arith.cmpi ne, %1, %c0_i32_0 : i32
    scf.if %2 {
      %cst_8 = arith.constant 0.000000e+00 : f32
      %9 = vector.broadcast %cst_8 : f32 to vector<16x96xf32>
      %c0_9 = arith.constant 0 : index
      %c0_10 = arith.constant 0 : index
      %10 = vector.load %arg5[%c0_9, %c0_10] : memref<16x96xf32, #tpu.memory_space<vmem>>, vector<16x96xf32>
      tpu.vector_store %arg5[%c0_9, %c0_10], %9 {strides = array<i32>} : memref<16x96xf32, #tpu.memory_space<vmem>>, vector<16x96xf32>,
    } else {
    }
    %c0 = arith.constant 0 : index
    %c0_1 = arith.constant 0 : index
    %3 = vector.load %arg5[%c0, %c0_1] : memref<16x96xf32, #tpu.memory_space<vmem>>, vector<16x96xf32>
    %c0_2 = arith.constant 0 : index
    %c0_3 = arith.constant 0 : index
    %4 = vector.load %arg3[%c0_2, %c0_3] : memref<16x32xf32, #tpu.memory_space<vmem>>, vector<16x32xf32>
    %c0_4 = arith.constant 0 : index
    %c0_5 = arith.constant 0 : index
    %5 = vector.load %arg4[%c0_4, %c0_5] : memref<32x96xf32, #tpu.memory_space<vmem>>, vector<32x96xf32>
    %cst = arith.constant dense<0.000000e+00> : vector<16x96xf32>
    %6 = tpu.matmul %4, %5, %cst {dimension_numbers = #tpu.dot_dimension_numbers<[1], [0], [0], [1], [0, 0, 1, 1], [], []>} : vector<16x32xf32>, vector<32x96xf32>, vector<16x96xf32> -> vector<16x96xf32>
    %7 = arith.addf %3, %6 : vector<16x96xf32>
    %c0_6 = arith.constant 0 : index
    %c0_7 = arith.constant 0 : index
    %8 = vector.load %arg5[%c0_6, %c0_7] : memref<16x96xf32, #tpu.memory_space<vmem>>, vector<16x96xf32>
    tpu.vector_store %arg5[%c0_6, %c0_7], %7 {strides = array<i32>} : memref<16x96xf32, #tpu.memory_space<vmem>>, vector<16x96xf32>,
    return
  }
  func.func @transform_0(%arg0: i32, %arg1: i32, %arg2: i32) -> (i32, i32) {
    %c0_i32 = arith.constant 0 : i32
    return %arg0, %arg2 : i32, i32
  }
  func.func @transform_1(%arg0: i32, %arg1: i32, %arg2: i32) -> (i32, i32) {
    %c0_i32 = arith.constant 0 : i32
    return %arg2, %arg1 : i32, i32
  }
  func.func @transform_2(%arg0: i32, %arg1: i32, %arg2: i32) -> (i32, i32) {
    %c0_i32 = arith.constant 0 : i32
    return %arg0, %arg1 : i32, i32
  }
}

</mosaic_0001>

<bundles_post_ra>
// kernel: tpu_custom_call.1
= control target key start
LH: loop header
LB: loop body
LE: loop exit
PB: predicated region body
PF: predicated region fallthrough
CT: control target
= control target key end

     0   :  { %7 = vsyncpa [#allocation3], 0  ;;  %s335_s0 = inlined_call_operand.hbm [shape: f32[16,32], index: 0, kind: input, shape index: {}]   ;;  %s336_s1 = inlined_call_operand.hbm [shape: f32[32,96], index: 1, kind: input, shape index: {}]   ;;  %s337_s2 = inlined_call_operand.hbm [shape: f32[16,96], index: 2, kind: output, shape index: {}]  }
   0x1   :  { %8 = vsyncpa [#allocation6], 0 }
   0x2   :  { %9 = vsyncpa [#allocation4], 0  ;;  %s265_s9 = smov [#allocation2]   ;;  %s193_s13 = scalar_lea.hbm %s335_s0, 256 }
   0x3   :  { %s15_s10 = sshll.u32 %s265_s9, 4  ;;  %p194_p0 = scmp.ne.s32.totalorder %s335_s0, %s193_s13  ;;  %s16_s10 = int_to_ptr.vmem [resolvable:$true] %s15_s10 }
   0x4   :  { %p197_p1 = scmp.lt.u32.totalorder %s193_s13, %s335_s0 }
   0x6   :  { %p199_p2 = pnand %p197_p1, %p194_p0 }
   0x8   :  { %202 = shalt.err (!%p199_p2)
}
   0x9   :  { %s203_s18 = scalar_lea.vmem %s16_s10, 256  ;;  %p208_p4 = scmp.lt.s32.totalorder %s16_s10, %s16_s10 }
   0xa   :  { %p204_p3 = scmp.ne.s32.totalorder %s16_s10, %s203_s18  ;;  %p209_p5 = scmp.lt.s32.totalorder %s203_s18, %s203_s18 }
   0xc   :  { %p210_p6 = por %p209_p5, %p208_p4 }
   0xe   :  { %p211_p7 = pnand %p210_p6, %p204_p3 }
  0x10   :  { %214 = shalt.err (!%p211_p7)
}
  0x11   :  { %s266_s19 = smov 128   ;;  %s267_s20 = smov 8  }
  0x12   :  { %21 = dma.hbm_to_vmem [thread:$0]  %s335_s0, 256, %s16_s10, [#allocation3], %s266_s19, %s266_s19, %s267_s20  }
  0x13   :  { %s268_s23 = smov [#allocation5]   ;;  %s215_s27 = scalar_lea.hbm %s336_s1, 512 }
  0x14   :  { %s27_s24 = sshll.u32 %s268_s23, 4  ;;  %p216_p8 = scmp.ne.s32.totalorder %s336_s1, %s215_s27  ;;  %s28_s24 = int_to_ptr.vmem [resolvable:$true] %s27_s24 }
  0x15   :  { %p219_p9 = scmp.lt.u32.totalorder %s215_s27, %s336_s1 }
  0x17   :  { %p221_p10 = pnand %p219_p9, %p216_p8 }
  0x19   :  { %224 = shalt.err (!%p221_p10)
}
  0x1a   :  { %s225_s4 = scalar_lea.vmem %s28_s24, 512  ;;  %p230_p12 = scmp.lt.s32.totalorder %s28_s24, %s28_s24 }
  0x1b   :  { %p226_p11 = scmp.ne.s32.totalorder %s28_s24, %s225_s4  ;;  %p231_p13 = scmp.lt.s32.totalorder %s225_s4, %s225_s4 }
  0x1d   :  { %p232_p0 = por %p231_p13, %p230_p12 }
  0x1f   :  { %p233_p1 = pnand %p232_p0, %p226_p11 }
  0x21   :  { %236 = shalt.err (!%p233_p1)
}
  0x22   :  { %33 = dma.hbm_to_vmem [thread:$0]  %s336_s1, 512, %s28_s24, [#allocation6], %s266_s19, %s266_s19, %s267_s20  }
  0x23   :  { %259 = dma.done.wait [#allocation3], 256  }
  0x24   :  { %260 = vsyncadd [#allocation3], 4294967040 }
  0x25   :  { %261 = dma.done.wait [#allocation6], 512  }
  0x26   :  { %262 = vsyncadd [#allocation6], 4294966784  ;;  %vm44_vm0 = vcmask 785408   ;;  %v269_v0 = vmov 0.0   ;;  %vm55_vm1 = vcmask 261120   ;;  %v51_v1 = vld [vmem:[#allocation5] sm:$0xff] }
  0x27   :  { %46 = vst.msk [vmem:[#allocation7 + $0x8] sm:$0xff] %vm44_vm0, %v269_v0  ;;  %45 = vst.msk [vmem:[#allocation7] sm:$0xff] %vm44_vm0, %v269_v0  ;;  %v52_v2 = vld [vmem:[#allocation5 + $0x8] sm:$0xff]  ;;  %v53_v3 = vld [vmem:[#allocation5 + $0x10] sm:$0xff]  ;;  %s270_s1 = smov [#allocation7]  }
  0x28   :  { %v179_v4 = vpack.c.bf16 %v52_v2, %v51_v1  ;;  %v54_v5 = vld [vmem:[#allocation5 + $0x18] sm:$0xff]  ;;  %v49_v6 = vld [vmem:[#allocation2] sm:$0xff]  ;;  %s147_s6 = sshll.u32 %s270_s1, 4  ;;  %s148_s6 = int_to_ptr.vmem [resolvable:$true] %s147_s6 }
  0x29   :  { %v183_v7 = vpack.c.bf16 %v54_v5, %v53_v3  ;;  %176 = vmatprep.mubr.msk.f32.mxu0 %vm55_vm1, %v49_v6  ;;  %v50_v8 = vld [vmem:[#allocation2 + $0x8] sm:$0xff]  ;;  %s237_s7 = scalar_lea.vmem %s148_s6, 256  ;;  %p242_p3 = scmp.lt.s32.totalorder %s148_s6, %s148_s6 }
  0x2a   :  { %180 = vmatprep.subr.bf16.mxu0 %v179_v4  ;;  %p238_p2 = scmp.ne.s32.totalorder %s148_s6, %s237_s7  ;;  %p243_p4 = scmp.lt.s32.totalorder %s237_s7, %s237_s7 }
  0x2b   :  { %182 = vmatpush3.bf16.msra.mxu0 %v179_v4 }
  0x2c   :  { %184 = vmatprep.subr.bf16.mxu0 %v183_v7  ;;  %p244_p5 = por %p243_p4, %p242_p3 }
  0x2e   :  { %v48_v9 = vld [vmem:[#allocation7 + $0x8] sm:$0xff]  ;;  %v47_v10 = vld [vmem:[#allocation7] sm:$0xff]  ;;  %p245_p6 = pnand %p244_p5, %p238_p2 }
  0x2f   :  { %186 = vmatpush3.bf16.msra.mxu0 %v183_v7 }
  0x32   :  { %177 = vmatmul.mubr.msk.f32.vlgmr.msra.gmra.mrb[0].mxu0 %vm55_vm1, %v50_v8 }
 0x105   :  { %v178_v11 = vpop.f32.mrb[0].mxu0 }
 0x106   :  { %v138_v12 = vadd.f32 %v178_v11, %v48_v9  ;;  %v128_v13 = vpop.f32.mrb[1].mxu0 }
 0x107   :  { %v137_v14 = vadd.f32 %v128_v13, %v47_v10 }
 0x108   :  { %141 = vst.msk [vmem:[#allocation7 + $0x8] sm:$0xff] %vm44_vm0, %v138_v12 }
 0x109   :  { %140 = vst.msk [vmem:[#allocation7] sm:$0xff] %vm44_vm0, %v137_v14 }
 0x10a   :  { %248 = shalt.err (!%p245_p6)
}
 0x10b   :  { %s249_s10 = scalar_lea.hbm %s337_s2, 256 }
 0x10c   :  { %p250_p7 = scmp.ne.s32.totalorder %s337_s2, %s249_s10  ;;  %p253_p8 = scmp.lt.u32.totalorder %s249_s10, %s337_s2 }
 0x10e   :  { %p255_p9 = pnand %p253_p8, %p250_p7 }
 0x110   :  { %258 = shalt.err (!%p255_p9)
}
 0x111   :  { %153 = dma.vmem_to_hbm [thread:$0]  %s148_s6, 256, %s337_s2, [#allocation4], %s266_s19, %s266_s19, %s267_s20  }
 0x112   :  { %263 = dma.done.wait [#allocation4], 256  }
 0x113   :  { %264 = vsyncadd [#allocation4], 4294967040 }
 0x114   :  { %157 = vsyncpa [#allocation3], 1 }
 0x115   :  { %158 = vsyncpa [#allocation6], 1 }
 0x116   :  { %159 = vsyncpa [#allocation4], 1 }

</bundles_post_ra>
